<compile_context>
chip_gen: v7x
topology: tpu7x:2x2x1
jax: 0.10.0
libtpu: 0.0.40
codegen_flags: <defaults>
</compile_context>

<pallas_src>
import functools

import jax
import jax.numpy as jnp
from jax.experimental import pallas as pl
from jax.experimental.pallas import tpu as pltpu

EPS = 1e-5                                   # torch InstanceNorm2d default eps


def _pick_vmem_limit():
    # v5e/v6e: 128 MiB physical -> ~96 MiB scoped; v7x: 64 MiB -> 48 MiB.
    try:
        cap = int(pltpu.get_tpu_info().vmem_capacity_bytes)
    except Exception:
        cap = 64 * 1024 * 1024
    limit = (cap * 3) // 4
    return int(min(max(limit, 48 * 1024 * 1024), 100 * 1024 * 1024))


VMEM_LIMIT = _pick_vmem_limit()


# ----------------------------------------------------------------------------
# InstanceNorm statistics (standalone pass; Chan-combine across HW tiles)
# ----------------------------------------------------------------------------
def _make_in_stats_kernel(hwt, hw):
    inv_t = 1.0 / hwt
    inv_hw = 1.0 / hw

    def kernel(h_ref, mean_ref, rstd_ref, m_sc, m2_sc):
        t = pl.program_id(1)
        h = h_ref[0].astype(jnp.float32)                      # (HWT, Cx)
        mu_t = jnp.sum(h, axis=0, keepdims=True) * inv_t      # (1, Cx)
        d = h - mu_t
        m2_t = jnp.sum(d * d, axis=0, keepdims=True)          # (1, Cx)

        @pl.when(t == 0)
        def _():
            m_sc[...] = mu_t
            m2_sc[...] = m2_t

        @pl.when(t > 0)
        def _():
            n_a = t.astype(jnp.float32) * hwt
            n = n_a + hwt
            delta = mu_t - m_sc[...]
            m_sc[...] = m_sc[...] + delta * (hwt / n)
            m2_sc[...] = m2_sc[...] + m2_t + delta * delta * (n_a * (hwt / n))

        @pl.when(t == pl.num_programs(1) - 1)
        def _():
            var = m2_sc[...] * inv_hw                          # biased variance
            mean_ref[0] = m_sc[...]
            rstd_ref[0] = jax.lax.rsqrt(var + EPS)

    return kernel


@jax.jit
def instance_norm_stats(h):
    """h: (N, H, W, Cx) bf16 -> mean, rstd, each (N, 1, Cx) f32."""
    N, H, W, Cx = h.shape
    HW = H * W
    HWT = min(HW, 8192)
    assert HW % HWT == 0
    T = HW // HWT
    hf = h.reshape(N, HW, Cx)
    return pl.pallas_call(
        _make_in_stats_kernel(HWT, HW),
        out_shape=(jax.ShapeDtypeStruct((N, 1, Cx), jnp.float32),
                   jax.ShapeDtypeStruct((N, 1, Cx), jnp.float32)),
        grid=(N, T),
        in_specs=[pl.BlockSpec((1, HWT, Cx), lambda n, t: (n, t, 0))],
        out_specs=(pl.BlockSpec((1, 1, Cx), lambda n, t: (n, 0, 0)),
                   pl.BlockSpec((1, 1, Cx), lambda n, t: (n, 0, 0))),
        scratch_shapes=[pltpu.VMEM((1, Cx), jnp.float32),
                        pltpu.VMEM((1, Cx), jnp.float32)],
        compiler_params=pltpu.CompilerParams(
            dimension_semantics=("parallel", "arbitrary"),
            vmem_limit_bytes=VMEM_LIMIT),
    )(hf)


def _finalize_stats(s, ss, hw):
    """Raw per-channel sum / sumsq (N,1,C) f32 -> mean, rstd."""
    mean = s * (1.0 / hw)
    var = jnp.maximum(ss * (1.0 / hw) - mean * mean, 0.0)
    return mean, jax.lax.rsqrt(var + EPS)


# ----------------------------------------------------------------------------
# ADD apply: normalize + packed bf16 1x1 GEMM (att beta|gamma) + id blend
# ----------------------------------------------------------------------------
def _make_add_apply_kernel(c_x):
    def kernel(h_ref, za_ref, mean_ref, rstd_ref, idb_ref, idg_ref,
               w_att_ref, b_att_ref, w_m_ref, b_m_ref, o_ref):
        h_norm = (h_ref[0].astype(jnp.float32) - mean_ref[0]) * rstd_ref[0]
        # One packed bf16 GEMM produces [att_beta | att_gamma] (lane halves).
        att = jnp.dot(za_ref[0], w_att_ref[...],
                      preferred_element_type=jnp.float32) + b_att_ref[...]
        att_beta = att[:, :c_x]
        att_gamma = att[:, c_x:]
        # Mask: VPU multiply + lane reduction (no degenerate width-1 matmul).
        m = jax.nn.sigmoid(
            jnp.sum(h_norm * w_m_ref[...], axis=-1, keepdims=True)
            + b_m_ref[...])
        a = att_gamma * h_norm + att_beta
        i = idg_ref[0] * h_norm + idb_ref[0]
        o_ref[0] = ((1.0 - m) * a + m * i).astype(o_ref.dtype)
    return kernel


@jax.jit
def add_apply(h, za, mean, rstd, id_b, id_g, p):
    """h:(N,H,W,Cx) bf16, za:(N,H,W,Catt) bf16, mean/rstd/id_b/id_g:(N,1,Cx) f32."""
    N, H, W, Cx = h.shape
    Catt = za.shape[-1]
    HW = H * W
    HWT = min(HW, 8192)
    assert HW % HWT == 0
    T = HW // HWT
    hf = h.reshape(N, HW, Cx)
    zaf = za.reshape(N, HW, Catt)

    def cspec(shape):
        nd = len(shape)
        return pl.BlockSpec(shape, lambda n, t, _nd=nd: (0,) * _nd)

    def pspec(c):
        return pl.BlockSpec((1, 1, c), lambda n, t: (n, 0, 0))

    out = pl.pallas_call(
        _make_add_apply_kernel(Cx),
        out_shape=jax.ShapeDtypeStruct((N, HW, Cx), jnp.bfloat16),
        grid=(N, T),
        in_specs=[
            pl.BlockSpec((1, HWT, Cx), lambda n, t: (n, t, 0)),
            pl.BlockSpec((1, HWT, Catt), lambda n, t: (n, t, 0)),
            pspec(Cx), pspec(Cx),                    # mean, rstd
            pspec(Cx), pspec(Cx),                    # id_beta, id_gamma
            cspec((Catt, 2 * Cx)), cspec((1, 2 * Cx)),
            cspec((1, Cx)), cspec((1, 1)),
        ],
        out_specs=pl.BlockSpec((1, HWT, Cx), lambda n, t: (n, t, 0)),
        compiler_params=pltpu.CompilerParams(
            dimension_semantics=("parallel", "parallel"),
            vmem_limit_bytes=VMEM_LIMIT),
    )(hf, zaf, mean, rstd, id_b, id_g,
      p["w_att"], p["b_att"], p["w_m"], p["b_m"])
    return out.reshape(N, H, W, Cx)


def _id_branch(z_id, p):
    """Per-sample id Linear (hoisted out of the per-tile kernel)."""
    idbg = jnp.dot(z_id, p["w_id"]) + p["b_id"]              # (N, 2*Cx) f32
    n, two_cx = idbg.shape
    c_x = two_cx // 2
    idbg = idbg.reshape(n, 1, two_cx)
    return idbg[:, :, :c_x], idbg[:, :, c_x:]


# ----------------------------------------------------------------------------
# ReLU + 3x3 conv (stride 1, pad 1, no bias): in-kernel zero padding, one
# ReLU'd bf16 slab per row tile, 9 slab GEMMs, optional fused residual add,
# tanh and per-channel sum/sumsq (InstanceNorm stats for the consuming ADD).
# ----------------------------------------------------------------------------
def _make_conv3x3_kernel(rb, H, W, c_in, c_out, has_res, apply_tanh, with_stats):
    flat = (W % 8 == 0)   # (rb, W, Cin) -> (rb*W, Cin) is a layout no-op then

    def kernel(*refs):
        i = 2
        x_ref, w_ref = refs[0], refs[1]
        res_ref = None
        if has_res:
            res_ref = refs[i]
            i += 1
        o_ref = refs[i]
        i += 1
        if with_stats:
            sum_ref, ssq_ref = refs[i], refs[i + 1]
            i += 2
        slab_ref = refs[i]

        r = pl.program_id(1)
        nrt = pl.num_programs(1)
        r0 = pl.multiple_of(r * rb, rb)

        # ---- Build the ReLU'd, zero-padded bf16 input slab once per tile ----
        zcol = jnp.zeros((rb + 2, 1, c_in), jnp.bfloat16)
        zrow = jnp.zeros((1, W, c_in), jnp.bfloat16)
        slab_ref[:, 0:1, :] = zcol
        slab_ref[:, W + 1:W + 2, :] = zcol
        slab_ref[1:rb + 1, 1:W + 1, :] = jnp.maximum(
            x_ref[0, pl.ds(r0, rb), :, :], 0.0)

        @pl.when(r > 0)
        def _():
            top = jnp.maximum(
                x_ref[0, pl.ds(jnp.maximum(r0 - 1, 0), 1), :, :], 0.0)
            slab_ref[0:1, 1:W + 1, :] = top

        @pl.when(r == 0)
        def _():
            slab_ref[0:1, 1:W + 1, :] = zrow

        @pl.when(r < nrt - 1)
        def _():
            bot = jnp.maximum(
                x_ref[0, pl.ds(jnp.minimum(r0 + rb, H - 1), 1), :, :], 0.0)
            slab_ref[rb + 1:rb + 2, 1:W + 1, :] = bot

        @pl.when(r == nrt - 1)
        def _():
            slab_ref[rb + 1:rb + 2, 1:W + 1, :] = zrow

        # ---- 9 shifted-tap GEMMs with f32 accumulation ----
        if flat:
            if has_res:
                acc = res_ref[0].astype(jnp.float32).reshape(rb * W, c_out)
            else:
                acc = jnp.zeros((rb * W, c_out), jnp.float32)
            for dy in range(3):
                for dx in range(3):
                    a = slab_ref[dy:dy + rb, dx:dx + W, :].reshape(rb * W, c_in)
                    acc = acc + jnp.dot(a, w_ref[dy * 3 + dx],
                                        preferred_element_type=jnp.float32)
            if with_stats:
                # NOTE: sum/sumsq in f32; acceptable for <=64K elements here.
                cs = jnp.sum(acc, axis=0, keepdims=True)
                cs2 = jnp.sum(acc * acc, axis=0, keepdims=True)
            if apply_tanh:
                acc = jnp.tanh(acc)
            o_ref[0] = acc.reshape(rb, W, c_out).astype(o_ref.dtype)
        else:
            # Tiny-spatial fallback (W < 8): per-output-row GEMMs.
            cs = jnp.zeros((1, c_out), jnp.float32)
            cs2 = jnp.zeros((1, c_out), jnp.float32)
            res = res_ref[0].astype(jnp.float32) if has_res else None
            for rr in range(rb):
                accr = (res[rr] if has_res
                        else jnp.zeros((W, c_out), jnp.float32))
                for dy in range(3):
                    for dx in range(3):
                        a = slab_ref[rr + dy, dx:dx + W, :]
                        accr = accr + jnp.dot(a, w_ref[dy * 3 + dx],
                                              preferred_element_type=jnp.float32)
                if with_stats:
                    cs = cs + jnp.sum(accr, axis=0, keepdims=True)
                    cs2 = cs2 + jnp.sum(accr * accr, axis=0, keepdims=True)
                if apply_tanh:
                    accr = jnp.tanh(accr)
                o_ref[0, rr] = accr.astype(o_ref.dtype)

        if with_stats:
            @pl.when(r == 0)
            def _():
                sum_ref[...] = jnp.zeros_like(sum_ref)
                ssq_ref[...] = jnp.zeros_like(ssq_ref)
            sum_ref[0] = sum_ref[0] + cs
            ssq_ref[0] = ssq_ref[0] + cs2

    return kernel


@functools.partial(jax.jit, static_argnames=("apply_tanh", "with_stats"))
def relu_conv3x3(x, w9, residual=None, *, apply_tanh=False, with_stats=False):
    """x: (N,H,W,Cin) bf16; w9: (9,Cin,Cout) bf16; residual: (N,H,W,Cout) bf16|None.

    Returns y (bf16) or (y, ch_sum, ch_sumsq) when with_stats (f32 (N,1,Cout))."""
    N, H, W, Cin = x.shape
    Cout = w9.shape[-1]
    # Row tile: target M = rb*W around 4096 MXU rows; powers of two -> divides H.
    rb = min(H, max(1, 4096 // W))
    assert H % rb == 0

    in_specs = [
        # Full (unpadded) image stays resident across the row-tile axis (bf16).
        pl.BlockSpec((1, H, W, Cin), lambda n, r: (n, 0, 0, 0)),
        pl.BlockSpec((9, Cin, Cout), lambda n, r: (0, 0, 0)),
    ]
    args = [x, w9]
    if residual is not None:
        in_specs.append(pl.BlockSpec((1, rb, W, Cout), lambda n, r: (n, r, 0, 0)))
        args.append(residual)

    if with_stats:
        out_shape = (jax.ShapeDtypeStruct((N, H, W, Cout), jnp.bfloat16),
                     jax.ShapeDtypeStruct((N, 1, Cout), jnp.float32),
                     jax.ShapeDtypeStruct((N, 1, Cout), jnp.float32))
        out_specs = (pl.BlockSpec((1, rb, W, Cout), lambda n, r: (n, r, 0, 0)),
                     pl.BlockSpec((1, 1, Cout), lambda n, r: (n, 0, 0)),
                     pl.BlockSpec((1, 1, Cout), lambda n, r: (n, 0, 0)))
        sem = ("parallel", "arbitrary")     # stats accumulate across row tiles
    else:
        out_shape = jax.ShapeDtypeStruct((N, H, W, Cout), jnp.bfloat16)
        out_specs = pl.BlockSpec((1, rb, W, Cout), lambda n, r: (n, r, 0, 0))
        sem = ("parallel", "parallel")      # rows independent -> megacore-able

    return pl.pallas_call(
        _make_conv3x3_kernel(rb, H, W, Cin, Cout, residual is not None,
                             apply_tanh, with_stats),
        out_shape=out_shape,
        grid=(N, H // rb),
        in_specs=in_specs,
        out_specs=out_specs,
        scratch_shapes=[pltpu.VMEM((rb + 2, W + 2, Cin), jnp.bfloat16)],
        compiler_params=pltpu.CompilerParams(
            dimension_semantics=sem, vmem_limit_bytes=VMEM_LIMIT),
    )(*args)


# ----------------------------------------------------------------------------
# ConvTranspose2d(c_id, c0, kernel=2, stride=1) on a 1x1 input == GEMM
# ----------------------------------------------------------------------------
def _matmul_kernel(a_ref, b_ref, o_ref):
    o_ref[...] = jnp.dot(a_ref[...], b_ref[...],
                         preferred_element_type=jnp.float32).astype(o_ref.dtype)


@jax.jit
def conv_transpose_2x2(z_id, w_t):
    """z_id: (N, Cid) f32; w_t: (Cid, 4*c0) f32 -> (N, 2, 2, c0) bf16."""
    N, _ = z_id.shape
    c0 = w_t.shape[-1] // 4
    out = pl.pallas_call(
        _matmul_kernel,
        out_shape=jax.ShapeDtypeStruct((N, w_t.shape[-1]), jnp.bfloat16),
        compiler_params=pltpu.CompilerParams(vmem_limit_bytes=VMEM_LIMIT),
    )(z_id, w_t)
    return out.reshape(N, 2, 2, c0)


# ----------------------------------------------------------------------------
# Bilinear x2 upsample, align_corners=True, as bf16 fixed-stencil matmuls
# ----------------------------------------------------------------------------
def _interp_matrix(in_size):
    out_size = 2 * in_size
    if in_size == 1:
        return jnp.ones((out_size, 1), jnp.float32)
    pos = jnp.arange(out_size, dtype=jnp.float32) * ((in_size - 1) / (out_size - 1))
    i0 = jnp.clip(jnp.floor(pos).astype(jnp.int32), 0, in_size - 2)
    frac = pos - i0.astype(jnp.float32)
    return (jax.nn.one_hot(i0, in_size, dtype=jnp.float32) * (1.0 - frac)[:, None]
            + jax.nn.one_hot(i0 + 1, in_size, dtype=jnp.float32) * frac[:, None])


@jax.jit
def upsample2x_bilinear(x):
    # TODO(synk): fold this fixed stencil into the next block's stats/apply read.
    _, H, W, _ = x.shape
    mh = _interp_matrix(H).astype(jnp.bfloat16)
    mw = _interp_matrix(W).astype(jnp.bfloat16)
    x = jnp.einsum('oh,nhwc->nowc', mh, x)
    x = jnp.einsum('pw,nowc->nopc', mw, x)
    return x


# ----------------------------------------------------------------------------
# Deterministic synthetic parameter init (shapes follow the module __init__)
# ----------------------------------------------------------------------------
def _xavier(key, shape, fan_in, fan_out):
    std = (2.0 / (fan_in + fan_out)) ** 0.5
    return std * jax.random.normal(key, shape, dtype=jnp.float32)


def init_add_params(key, c_x, c_att, c_id):
    ks = jax.random.split(key, 4)
    w_ab = _xavier(ks[0], (c_att, c_x), c_att, c_x)          # att_conv1 (1x1)
    w_ag = _xavier(ks[1], (c_att, c_x), c_att, c_x)          # att_conv2 (1x1)
    return {
        "w_att": jnp.concatenate([w_ab, w_ag], axis=1).astype(jnp.bfloat16),
        "b_att": jnp.zeros((1, 2 * c_x), jnp.float32),
        # id_fc1 / id_fc2 packed; applied once per sample in the wrapper.
        "w_id": 0.001 * jax.random.normal(ks[2], (c_id, 2 * c_x), jnp.float32),
        "b_id": jnp.zeros((2 * c_x,), jnp.float32),
        "w_m": _xavier(ks[3], (1, c_x), c_x, 1),              # h_conv (1x1)
        "b_m": jnp.zeros((1, 1), jnp.float32),
    }


def init_conv_params(key, c_in, c_out):
    # 3x3 conv weight pre-packed per tap: (9, c_in, c_out), bf16 for the MXU.
    return _xavier(key, (9, c_in, c_out), 9 * c_in, 9 * c_out).astype(jnp.bfloat16)


def init_resblk_params(key, c_in, c_out, c_att, c_id):
    ks = jax.random.split(key, 6)
    p = {
        "add1": init_add_params(ks[0], c_in, c_att, c_id),
        # add2 exists in the torch module but is never used in forward().
        "add2": init_add_params(ks[1], c_in, c_att, c_id),
        "conv1": init_conv_params(ks[2], c_in, c_in),
        "conv2": init_conv_params(ks[3], c_in, c_out),
        "add3": None,
        "conv3": None,
    }
    if c_in != c_out:
        p["add3"] = init_add_params(ks[4], c_in, c_att, c_id)
        p["conv3"] = init_conv_params(ks[5], c_in, c_out)
    return p


def init_generator_params(key, c_id, x_chs, att_chs):
    keys = jax.random.split(key, len(att_chs) + 1)
    c0 = x_chs[0]
    return {
        "conv_t": _xavier(keys[0], (c_id, 4 * c0), 4 * c_id, 4 * c0),
        "blocks": [
            init_resblk_params(keys[i + 1], x_chs[i], x_chs[i + 1],
                               att_chs[i], c_id)
            for i in range(len(att_chs))
        ],
    }


# ----------------------------------------------------------------------------
# Module forward passes (glue around the Pallas kernels)
# ----------------------------------------------------------------------------
def resblk_forward(h, za, z_id, p, apply_tanh=False):
    _, H, W, _ = h.shape
    hw = H * W
    # h is normalized identically by add1 and add3 -> share its stats.
    mean_h, rstd_h = instance_norm_stats(h)

    idb1, idg1 = _id_branch(z_id, p["add1"])
    x = add_apply(h, za, mean_h, rstd_h, idb1, idg1, p["add1"])
    # conv1 emits the InstanceNorm sums for the following ADD in its epilogue.
    x, s, ss = relu_conv3x3(x, p["conv1"], with_stats=True)
    mean_x, rstd_x = _finalize_stats(s, ss, hw)
    # Faithful to the torch forward(): add1 is re-used here (add2 never runs).
    x = add_apply(x, za, mean_x, rstd_x, idb1, idg1, p["add1"])
    if p["conv3"] is not None:
        idb3, idg3 = _id_branch(z_id, p["add3"])
        hres = add_apply(h, za, mean_h, rstd_h, idb3, idg3, p["add3"])
        hres = relu_conv3x3(hres, p["conv3"])
    else:
        hres = h
    # conv2 fuses the residual add (and the generator's final tanh) as epilogue.
    return relu_conv3x3(x, p["conv2"], residual=hres, apply_tanh=apply_tanh)


def add_generator_forward(z_att_list, z_id, params):
    x = conv_transpose_2x2(z_id, params["conv_t"])            # (N, 2, 2, c0)
    n_blocks = len(params["blocks"])
    for i in range(n_blocks):
        za = z_att_list[i].astype(jnp.bfloat16)
        x = resblk_forward(x, za, z_id, params["blocks"][i],
                           apply_tanh=(i == n_blocks - 1))
        if i < n_blocks - 1:
            x = upsample2x_bilinear(x)
    return x.astype(jnp.float32)


# ----------------------------------------------------------------------------
if __name__ == "__main__":
    # Channel widths scaled down (WIDTH_DIV) so the demo runs at small shapes;
    # structure and spatial pyramid (2x2 -> 256x256, 8 ADDResBlks, bilinear x2
    # between blocks) exactly follow the module's forward pass.  bf16 storage
    # and bf16 MXU operands mean results are not bit-identical to f32 torch.
    WIDTH_DIV = 16
    C_ID = 32
    BATCH = 2
    x_chs = [max(c // WIDTH_DIV, 4)
             for c in [1024, 1024, 1024, 1024, 512, 256, 128, 64]] + [3]
    att_chs = [max(c // WIDTH_DIV, 4)
               for c in [1024, 2048, 1024, 512, 256, 128, 64, 64]]

    key = jax.random.PRNGKey(0)
    keys = jax.random.split(key, 2 + len(att_chs))
    kp, kz, ka = keys[0], keys[1], keys[2:]

    params = init_generator_params(kp, C_ID, x_chs, att_chs)
    z_id = jax.random.normal(kz, (BATCH, C_ID), dtype=jnp.float32)
    z_att = [
        jax.random.normal(ka[i],
                          (BATCH, 2 * (2 ** i), 2 * (2 ** i), att_chs[i]),
                          dtype=jnp.float32)
        for i in range(len(att_chs))
    ]

    out = add_generator_forward(z_att, z_id, params)
    out = jax.block_until_ready(out)
    assert out.shape == (BATCH, 256, 256, 3)    # NHWC of torch (N, 3, 256, 256)
    assert bool(jnp.all(jnp.isfinite(out)))
    print("KERNEL_OK")
</pallas_src>

<mosaic_0001>
module attributes {stable_mosaic.version = 11 : i64} {
  func.func @_matmul_kernel(%arg0: memref<2x32xf32, #tpu.memory_space<vmem>>, %arg1: memref<32x256xf32, #tpu.memory_space<vmem>>, %arg2: memref<2x256xbf16, #tpu.memory_space<vmem>>) attributes {dimension_semantics = [], scalar_prefetch = 0 : i64, scratch_operands = 0 : i64, tpu.core_type = #tpu.core_type<tc>} {
    %c0 = arith.constant 0 : index
    %c0_0 = arith.constant 0 : index
    %0 = vector.load %arg0[%c0, %c0_0] : memref<2x32xf32, #tpu.memory_space<vmem>>, vector<2x32xf32>
    %c0_1 = arith.constant 0 : index
    %c0_2 = arith.constant 0 : index
    %1 = vector.load %arg1[%c0_1, %c0_2] : memref<32x256xf32, #tpu.memory_space<vmem>>, vector<32x256xf32>
    %cst = arith.constant dense<0.000000e+00> : vector<2x256xf32>
    %2 = tpu.matmul %0, %1, %cst {dimension_numbers = #tpu.dot_dimension_numbers<[1], [0], [0], [1], [0, 0, 1, 1], [], []>} : vector<2x32xf32>, vector<32x256xf32>, vector<2x256xf32> -> vector<2x256xf32>
    %3 = arith.truncf %2 : vector<2x256xf32> to vector<2x256xbf16>
    %c0_3 = arith.constant 0 : index
    %c0_4 = arith.constant 0 : index
    %4 = vector.load %arg2[%c0_3, %c0_4] : memref<2x256xbf16, #tpu.memory_space<vmem>>, vector<2x256xbf16>
    tpu.vector_store %arg2[%c0_3, %c0_4], %3 {strides = array<i32>} : memref<2x256xbf16, #tpu.memory_space<vmem>>, vector<2x256xbf16>,
    return
  }
}

</mosaic_0001>

<bundles_post_ra>
// kernel: conv_transpose_2x2.1
= control target key start
LH: loop header
LB: loop body
LE: loop exit
PB: predicated region body
PF: predicated region fallthrough
CT: control target
= control target key end

     0   :  { %7 = vsyncpa [#allocation3], 0  ;;  %s268_s0 = inlined_call_operand.hbm [shape: f32[2,32], index: 0, kind: input, shape index: {}]   ;;  %s269_s1 = inlined_call_operand.hbm [shape: f32[32,256], index: 1, kind: input, shape index: {}]   ;;  %s270_s2 = inlined_call_operand.vmem [shape: bf16[2,256], index: 2, kind: output, shape index: {}]  }
   0x1   :  { %8 = vsyncpa [#allocation5], 0  ;;  %s213_s9 = smov [#allocation2]   ;;  %s214_s11 = smov [#allocation4]  }
   0x2   :  { %s15_s10 = sshll.u32 %s213_s9, 4  ;;  %s24_s12 = sshll.u32 %s214_s11, 4  ;;  %s16_s10 = int_to_ptr.vmem [resolvable:$true] %s15_s10  ;;  %s234_s12 = int_to_ptr.vmem [resolvable:$true] %s24_s12 }
   0x3   :  { %s165_s15 = scalar_lea.hbm %s268_s0, 32 }
   0x4   :  { %p166_p0 = scmp.ne.s32.totalorder %s268_s0, %s165_s15  ;;  %p169_p1 = scmp.lt.u32.totalorder %s165_s15, %s268_s0 }
   0x6   :  { %p171_p2 = pnand %p169_p1, %p166_p0 }
   0x8   :  { %174 = shalt.err (!%p171_p2)
}
   0x9   :  { %s175_s20 = scalar_lea.vmem %s16_s10, 32  ;;  %p180_p4 = scmp.lt.s32.totalorder %s16_s10, %s16_s10 }
   0xa   :  { %p176_p3 = scmp.ne.s32.totalorder %s16_s10, %s175_s20  ;;  %p181_p5 = scmp.lt.s32.totalorder %s175_s20, %s175_s20 }
   0xc   :  { %p182_p6 = por %p181_p5, %p180_p4 }
   0xe   :  { %p183_p7 = pnand %p182_p6, %p176_p3 }
  0x10   :  { %186 = shalt.err (!%p183_p7)
}
  0x11   :  { %18 = dma.hbm_to_vmem [thread:$0]  %s268_s0, 32, %s16_s10, [#allocation3]  }
  0x12   :  { %s187_s25 = scalar_lea.hbm %s269_s1, 1024 }
  0x13   :  { %p188_p8 = scmp.ne.s32.totalorder %s269_s1, %s187_s25  ;;  %p191_p9 = scmp.lt.u32.totalorder %s187_s25, %s269_s1 }
  0x15   :  { %p193_p10 = pnand %p191_p9, %p188_p8 }
  0x17   :  { %196 = shalt.err (!%p193_p10)
}
  0x18   :  { %s197_s30 = scalar_lea.vmem %s234_s12, 1024  ;;  %p202_p12 = scmp.lt.s32.totalorder %s234_s12, %s234_s12 }
  0x19   :  { %p198_p11 = scmp.ne.s32.totalorder %s234_s12, %s197_s30  ;;  %p203_p13 = scmp.lt.s32.totalorder %s197_s30, %s197_s30 }
  0x1b   :  { %p204_p0 = por %p203_p13, %p202_p12 }
  0x1d   :  { %p205_p1 = pnand %p204_p0, %p198_p11 }
  0x1f   :  { %208 = shalt.err (!%p205_p1)
}
  0x20   :  { %s215_s0 = smov 256   ;;  %s216_s3 = smov 16  }
  0x21   :  { %30 = dma.hbm_to_vmem [thread:$0]  %s269_s1, 1024, %s234_s12, [#allocation5], %s215_s0, %s215_s0, %s216_s3  }
  0x22   :  { %209 = dma.done.wait [#allocation3], 32  }
  0x23   :  { %210 = vsyncadd [#allocation3], 4294967264 }
  0x24   :  { %211 = dma.done.wait [#allocation5], 1024  }
  0x25   :  { %212 = vsyncadd [#allocation5], 4294966272  ;;  %v217_v0 = vmov 0.0   ;;  %v39_v1 = vld [vmem:[#allocation4 + $0x8] sm:$0xff]  ;;  %v41_v2 = vld [vmem:[#allocation4 + $0x18] sm:$0xff]  ;;  %vm46_vm0 = vcmask 261120   ;;  %v129_v16 = vlaneseq }
  0x26   :  { %114 = vmatprep.mubr.f32.mxu0 %v217_v0  ;;  %v38_v3 = vld [vmem:[#allocation4] sm:$0xff]  ;;  %v151_v4 = vpack.c.bf16 %v41_v2, %v39_v1  ;;  %v40_v5 = vld [vmem:[#allocation4 + $0x10] sm:$0xff]  ;;  %v43_v6 = vld [vmem:[#allocation4 + $0x28] sm:$0xff]  ;;  %v218_v14 = vmov 1966171168  }
  0x27   :  { %v45_v7 = vld [vmem:[#allocation4 + $0x38] sm:$0xff]  ;;  %v153_v8 = vpack.c.bf16 %v40_v5, %v38_v3  ;;  %v42_v10 = vld [vmem:[#allocation4 + $0x20] sm:$0xff]  ;;  %v44_v11 = vld [vmem:[#allocation4 + $0x30] sm:$0xff]  ;;  %v127_v15 = vunpack.c.l.s4 %v218_v14  ;;  %v130_v18 = vshrl.u32 %v129_v16, 7 }
  0x28   :  { %v155_v9 = vpack.c.bf16 %v45_v7, %v43_v6  ;;  %152 = vmatprep.subr.bf16.mxu0 %v151_v4  ;;  %v157_v12 = vpack.c.bf16 %v44_v11, %v42_v10  ;;  %v37_v13 = vld [vmem:[#allocation2] sm:$0x3] }
  0x29   :  { %154 = vmatpush1.bf16.msra.mxu0 %v153_v8  ;;  %v128_v17 = vunpack.c.0.s8 %v127_v15 }
  0x2a   :  { %156 = vmatprep.subr.bf16.mxu0 %v155_v9 }
  0x2b   :  { %v131_v20 = vsub.s32 %v128_v17, %v130_v18 }
  0x2d   :  { %158 = vmatpush1.bf16.msra.mxu0 %v157_v12 }
  0x30   :  { %148 = vmatmul.mubr.msk.f32.vlgmr.msra.gmra.mrb[0].mxu0 %vm46_vm0, %v37_v13 }
 0x103   :  { %v116_v19 = vpop.f32.mrb[0].mxu0 }
 0x104   :  { %v118_v21 = vpop.f32.mrb[1].mxu0 }
 0x105   :  { %v149_v22 = vpack.c.bf16 %v118_v21, %v116_v19 }
 0x107   :  { %v132_v23 = vrot.slane %v149_v22, %v131_v20 }
 0x109   :  { %150 = vst.sshfl [vmem:[%s270_s2] sm:$0x5 pattern:$0x73625140] %v132_v23 }
 0x10a   :  { %146 = vsyncpa [#allocation3], 1 }
 0x10b   :  { %147 = vsyncpa [#allocation5], 1 }

</bundles_post_ra>
